<compile_context>
chip_gen: v7x
topology: tpu7x:2x2x1
jax: 0.10.0
libtpu: 0.0.40
codegen_flags: <defaults>
</compile_context>

<pallas_src>
import functools

import jax
import jax.numpy as jnp
from jax.experimental import pallas as pl
from jax.experimental.pallas import tpu as pltpu

NUM_STATE = 1000
HIDDEN = 100
NUM_ACTION = 200

# Padded to native 128-lane width.
HIDDEN_PAD = 128
ACTION_PAD = 256

NEG_BIG = -1e30  # finite "minus infinity" bias for padded action lanes (no inf-inf NaNs)


def _round_up(n, m):
    return ((n + m - 1) // m) * m


def _choose_tb(batch, tb_max):
    """Batch tile: multiple of 16 (bf16 sublane packing), >=2 tiles when possible (v7x)."""
    if batch <= 16:
        return batch  # single full-extent block (block dim == array dim is always legal)
    return max(16, min(tb_max, _round_up(pl.cdiv(batch, 2), 16)))


def actor_kernel(x_ref, w1_ref, b1_ref, w2_ref, b2_ref, o_ref):
    # fc1 + ReLU. bf16 MXU inputs, f32 accumulation. Padded hidden lanes are exactly 0.
    h = jnp.dot(x_ref[...], w1_ref[...], preferred_element_type=jnp.float32)
    h = jnp.maximum(h + b1_ref[...], 0.0)

    # action_head. Padded action lanes carry a NEG_BIG bias -> exp() == 0 below.
    logits = jnp.dot(h.astype(jnp.bfloat16), w2_ref[...],
                     preferred_element_type=jnp.float32) + b2_ref[...]

    # Numerically stable per-row softmax; padded lanes drop out.
    m = jnp.max(logits, axis=1, keepdims=True)
    e = jnp.exp(logits - m)
    denom = jnp.sum(e, axis=1, keepdims=True)
    # Exact reciprocal (kernel is HBM-bound; approx=True would only save an EUP slot
    # at the cost of ~1e-3 row-sum error for downstream samplers).
    o_ref[...] = (e * pl.reciprocal(denom, approx=False)).astype(o_ref.dtype)


def prepare_params(w1, b1, w2, b2):
    """Pad weights to (1000,128)/(128,256); cast matmul weights to bf16. Call once.

    Padded hidden columns are exact zeros; padded action biases are NEG_BIG so the
    softmax over the real 200 actions is unchanged.
    """
    w1p = (jnp.zeros((NUM_STATE, HIDDEN_PAD), jnp.float32)
           .at[:, :HIDDEN].set(w1).astype(jnp.bfloat16))
    b1p = (jnp.zeros((1, HIDDEN_PAD), jnp.float32)
           .at[:, :HIDDEN].set(jnp.asarray(b1, jnp.float32).reshape(1, -1)))
    w2p = (jnp.zeros((HIDDEN_PAD, ACTION_PAD), jnp.float32)
           .at[:HIDDEN, :NUM_ACTION].set(w2).astype(jnp.bfloat16))
    b2p = (jnp.full((1, ACTION_PAD), NEG_BIG, jnp.float32)
           .at[:, :NUM_ACTION].set(jnp.asarray(b2, jnp.float32).reshape(1, -1)))
    return w1p, b1p, w2p, b2p


@functools.partial(jax.jit, static_argnames=("tb_max",))
def actor_forward_padded(x, w1p, b1p, w2p, b2p, *, tb_max=1024):
    """Returns (B, ACTION_PAD) softmax probabilities; lanes [200:256] are exactly 0."""
    x = x.reshape(-1, NUM_STATE).astype(jnp.bfloat16)   # mirrors x.view(-1, num_state)
    B = x.shape[0]
    tb = _choose_tb(B, tb_max)
    grid = (pl.cdiv(B, tb),)   # ragged last block is clipped by Pallas (no pad copy)

    cost = pl.CostEstimate(
        flops=2 * B * (NUM_STATE * HIDDEN_PAD + HIDDEN_PAD * ACTION_PAD),
        transcendentals=B * ACTION_PAD,
        bytes_accessed=(2 * (B * NUM_STATE + NUM_STATE * HIDDEN_PAD
                             + HIDDEN_PAD * ACTION_PAD)
                        + 4 * (B * ACTION_PAD + HIDDEN_PAD + ACTION_PAD)),
    )

    resident = dict(pipeline_mode=pl.Buffered(1))   # grid-invariant: skip double buffer
    return pl.pallas_call(
        actor_kernel,
        out_shape=jax.ShapeDtypeStruct((B, ACTION_PAD), jnp.float32),
        grid=grid,
        in_specs=[
            pl.BlockSpec((tb, NUM_STATE), lambda i: (i, 0)),              # streamed x tiles
            pl.BlockSpec((NUM_STATE, HIDDEN_PAD), lambda i: (0, 0), **resident),
            pl.BlockSpec((1, HIDDEN_PAD), lambda i: (0, 0), **resident),
            pl.BlockSpec((HIDDEN_PAD, ACTION_PAD), lambda i: (0, 0), **resident),
            pl.BlockSpec((1, ACTION_PAD), lambda i: (0, 0), **resident),
        ],
        out_specs=pl.BlockSpec((tb, ACTION_PAD), lambda i: (i, 0)),       # lane-dense store
        compiler_params=pltpu.CompilerParams(
            dimension_semantics=("parallel",),       # shard batch tiles over v7x's 2 TCs
            vmem_limit_bytes=48 * 1024 * 1024,       # > scoped defaults, < 64 MiB/TC (v7x)
        ),
        cost_estimate=cost,
    )(x, w1p, b1p, w2p, b2p)


def actor_forward(x, w1p, b1p, w2p, b2p, *, tb_max=1024):
    """Module-compatible (B, NUM_ACTION) probabilities.

    Note: the [:, :200] slice costs an extra HBM copy; perf-critical consumers
    should use actor_forward_padded (padded lanes are 0) and fuse the slice
    into the consuming op.
    """
    return actor_forward_padded(x, w1p, b1p, w2p, b2p, tb_max=tb_max)[:, :NUM_ACTION]


def init_params(key):
    """Deterministic init mimicking PyTorch nn.Linear default U[-1/sqrt(fan_in), +1/sqrt(fan_in)]."""
    k1, k2, k3, k4 = jax.random.split(key, 4)
    bound1 = 1.0 / jnp.sqrt(NUM_STATE)
    bound2 = 1.0 / jnp.sqrt(HIDDEN)
    # Stored as (in, out) = transpose of PyTorch's (out, in) weight layout.
    w1 = jax.random.uniform(k1, (NUM_STATE, HIDDEN), jnp.float32, -bound1, bound1)
    b1 = jax.random.uniform(k2, (1, HIDDEN), jnp.float32, -bound1, bound1)
    w2 = jax.random.uniform(k3, (HIDDEN, NUM_ACTION), jnp.float32, -bound2, bound2)
    b2 = jax.random.uniform(k4, (1, NUM_ACTION), jnp.float32, -bound2, bound2)
    return w1, b1, w2, b2


# TODO(synk): fc2 = nn.Linear(1000, 100) exists in __init__ but is unused in forward();
# intentionally not implemented.

if __name__ == "__main__":
    key = jax.random.PRNGKey(0)
    k_params, k_x1, k_x2 = jax.random.split(key, 3)

    w1, b1, w2, b2 = init_params(k_params)
    params = prepare_params(w1, b1, w2, b2)

    def reference(xv):
        h = jnp.maximum(xv @ w1 + b1, 0.0)
        return jax.nn.softmax(h @ w2 + b2, axis=1)

    # Small demo batch (mirrors the module's x.view(-1, num_state)).
    B = 2
    x = jax.random.normal(k_x1, (B, NUM_STATE), jnp.float32)
    probs = jax.block_until_ready(actor_forward(x, *params))
    ref = reference(x)
    assert probs.shape == (B, NUM_ACTION)
    assert jnp.allclose(jnp.sum(probs, axis=1), 1.0, atol=1e-3)
    # bf16 matmul inputs -> compare with a correspondingly loosened tolerance.
    assert jnp.allclose(probs, ref, atol=2e-3, rtol=2e-2)

    # Larger, ragged batch: multi-tile pipelining, clipped last block, no pad copy.
    B2 = 300
    x2 = jax.random.normal(k_x2, (B2, NUM_STATE), jnp.float32)
    probs2_pad = jax.block_until_ready(actor_forward_padded(x2, *params))
    assert probs2_pad.shape == (B2, ACTION_PAD)
    assert jnp.all(probs2_pad[:, NUM_ACTION:] == 0.0)       # padded lanes are exactly zero
    probs2 = probs2_pad[:, :NUM_ACTION]
    ref2 = reference(x2)
    assert jnp.allclose(probs2, ref2, atol=2e-3, rtol=2e-2)

    print("KERNEL_OK")
</pallas_src>

<mosaic_0001>
module attributes {stable_mosaic.version = 11 : i64} {
  func.func @actor_kernel(%arg0: i32, %arg1: memref<2x1000xbf16, #tpu.memory_space<vmem>>, %arg2: memref<1000x128xbf16, #tpu.memory_space<vmem>>, %arg3: memref<1x128xf32, #tpu.memory_space<vmem>>, %arg4: memref<128x256xbf16, #tpu.memory_space<vmem>>, %arg5: memref<1x256xf32, #tpu.memory_space<vmem>>, %arg6: memref<2x256xf32, #tpu.memory_space<vmem>>) attributes {dimension_semantics = [#tpu.dimension_semantics<parallel>], iteration_bounds = array<i64: 1>, scalar_prefetch = 0 : i64, scratch_operands = 0 : i64, tpu.core_type = #tpu.core_type<tc>, window_params = [{transform_indices = @transform_0, window_bounds = array<i64: 2, 1000>}, {pipeline_mode = #tpu.pipeline_mode<synchronous>, transform_indices = @transform_1, window_bounds = array<i64: 1000, 128>}, {pipeline_mode = #tpu.pipeline_mode<synchronous>, transform_indices = @transform_2, window_bounds = array<i64: 1, 128>}, {pipeline_mode = #tpu.pipeline_mode<synchronous>, transform_indices = @transform_3, window_bounds = array<i64: 128, 256>}, {pipeline_mode = #tpu.pipeline_mode<synchronous>, transform_indices = @transform_4, window_bounds = array<i64: 1, 256>}, {transform_indices = @transform_5, window_bounds = array<i64: 2, 256>}]} {
    %c0 = arith.constant 0 : index
    %c0_0 = arith.constant 0 : index
    %0 = vector.load %arg1[%c0, %c0_0] : memref<2x1000xbf16, #tpu.memory_space<vmem>>, vector<2x1000xbf16>
    %c0_1 = arith.constant 0 : index
    %c0_2 = arith.constant 0 : index
    %1 = vector.load %arg2[%c0_1, %c0_2] : memref<1000x128xbf16, #tpu.memory_space<vmem>>, vector<1000x128xbf16>
    %cst = arith.constant dense<0.000000e+00> : vector<2x128xf32>
    %2 = tpu.matmul %0, %1, %cst {dimension_numbers = #tpu.dot_dimension_numbers<[1], [0], [0], [1], [0, 0, 1, 1], [], []>} : vector<2x1000xbf16>, vector<1000x128xbf16>, vector<2x128xf32> -> vector<2x128xf32>
    %c0_3 = arith.constant 0 : index
    %c0_4 = arith.constant 0 : index
    %3 = vector.load %arg3[%c0_3, %c0_4] : memref<1x128xf32, #tpu.memory_space<vmem>>, vector<1x128xf32>
    %4 = vector.broadcast %3 : vector<1x128xf32> to vector<2x128xf32>
    %5 = arith.addf %2, %4 : vector<2x128xf32>
    %cst_5 = arith.constant 0.000000e+00 : f32
    %6 = vector.broadcast %cst_5 : f32 to vector<2x128xf32>
    %7 = arith.maximumf %5, %6 : vector<2x128xf32>
    %8 = arith.truncf %7 : vector<2x128xf32> to vector<2x128xbf16>
    %c0_6 = arith.constant 0 : index
    %c0_7 = arith.constant 0 : index
    %9 = vector.load %arg4[%c0_6, %c0_7] : memref<128x256xbf16, #tpu.memory_space<vmem>>, vector<128x256xbf16>
    %cst_8 = arith.constant dense<0.000000e+00> : vector<2x256xf32>
    %10 = tpu.matmul %8, %9, %cst_8 {dimension_numbers = #tpu.dot_dimension_numbers<[1], [0], [0], [1], [0, 0, 1, 1], [], []>} : vector<2x128xbf16>, vector<128x256xbf16>, vector<2x256xf32> -> vector<2x256xf32>
    %c0_9 = arith.constant 0 : index
    %c0_10 = arith.constant 0 : index
    %11 = vector.load %arg5[%c0_9, %c0_10] : memref<1x256xf32, #tpu.memory_space<vmem>>, vector<1x256xf32>
    %12 = vector.broadcast %11 : vector<1x256xf32> to vector<2x256xf32>
    %13 = arith.addf %10, %12 : vector<2x256xf32>
    %cst_11 = arith.constant dense<0xFF800000> : vector<2xf32>
    %14 = vector.multi_reduction <maximumf>, %13, %cst_11 [1] : vector<2x256xf32> to vector<2xf32>
    %15 = vector.shape_cast %14 : vector<2xf32> to vector<2x1xf32>
    %16 = vector.broadcast %15 : vector<2x1xf32> to vector<2x256xf32>
    %17 = arith.subf %13, %16 : vector<2x256xf32>
    %18 = math.exp %17 : vector<2x256xf32>
    %cst_12 = arith.constant dense<0.000000e+00> : vector<2xf32>
    %19 = vector.multi_reduction <add>, %18, %cst_12 [1] : vector<2x256xf32> to vector<2xf32>
    %20 = vector.shape_cast %19 : vector<2xf32> to vector<2x1xf32>
    %21 = tpu.reciprocal %20 : vector<2x1xf32> -> vector<2x1xf32>
    %22 = vector.broadcast %21 : vector<2x1xf32> to vector<2x256xf32>
    %23 = arith.mulf %18, %22 : vector<2x256xf32>
    %c0_13 = arith.constant 0 : index
    %c0_14 = arith.constant 0 : index
    %24 = vector.load %arg6[%c0_13, %c0_14] : memref<2x256xf32, #tpu.memory_space<vmem>>, vector<2x256xf32>
    tpu.vector_store %arg6[%c0_13, %c0_14], %23 {strides = array<i32>} : memref<2x256xf32, #tpu.memory_space<vmem>>, vector<2x256xf32>,
    return
  }
  func.func @transform_0(%arg0: i32) -> (i32, i32) {
    %c0_i32 = arith.constant 0 : i32
    %c0_i32_0 = arith.constant 0 : i32
    return %arg0, %c0_i32 : i32, i32
  }
  func.func @transform_1(%arg0: i32) -> (i32, i32) {
    %c0_i32 = arith.constant 0 : i32
    %c0_i32_0 = arith.constant 0 : i32
    %c0_i32_1 = arith.constant 0 : i32
    return %c0_i32, %c0_i32_0 : i32, i32
  }
  func.func @transform_2(%arg0: i32) -> (i32, i32) {
    %c0_i32 = arith.constant 0 : i32
    %c0_i32_0 = arith.constant 0 : i32
    %c0_i32_1 = arith.constant 0 : i32
    return %c0_i32, %c0_i32_0 : i32, i32
  }
  func.func @transform_3(%arg0: i32) -> (i32, i32) {
    %c0_i32 = arith.constant 0 : i32
    %c0_i32_0 = arith.constant 0 : i32
    %c0_i32_1 = arith.constant 0 : i32
    return %c0_i32, %c0_i32_0 : i32, i32
  }
  func.func @transform_4(%arg0: i32) -> (i32, i32) {
    %c0_i32 = arith.constant 0 : i32
    %c0_i32_0 = arith.constant 0 : i32
    %c0_i32_1 = arith.constant 0 : i32
    return %c0_i32, %c0_i32_0 : i32, i32
  }
  func.func @transform_5(%arg0: i32) -> (i32, i32) {
    %c0_i32 = arith.constant 0 : i32
    %c0_i32_0 = arith.constant 0 : i32
    return %arg0, %c0_i32 : i32, i32
  }
}

</mosaic_0001>

<bundles_post_ra>
// kernel: actor_forward_padded.1
= control target key start
LH: loop header
LB: loop body
LE: loop exit
PB: predicated region body
PF: predicated region fallthrough
CT: control target
= control target key end

     0   :  { %10 = vsyncpa [#allocation3], 0  ;;  %s1427_s0 = inlined_call_operand.vmem [shape: bf16[2,1000], index: 0, kind: input, shape index: {}]   ;;  %s1428_s1 = inlined_call_operand.hbm [shape: bf16[1000,128], index: 1, kind: input, shape index: {}]   ;;  %s1429_s2 = inlined_call_operand.vmem [shape: f32[1,128], index: 2, kind: input, shape index: {}]   ;;  %s1430_s3 = inlined_call_operand.hbm [shape: bf16[128,256], index: 3, kind: input, shape index: {}]   ;;  %s1431_s4 = inlined_call_operand.vmem [shape: f32[1,256], index: 4, kind: input, shape index: {}]   ;;  %s1432_s5 = inlined_call_operand.hbm [shape: f32[2,256], index: 5, kind: output, shape index: {}]  }
   0x1   :  { %11 = vsyncpa [#allocation6], 0 }
   0x2   :  { %12 = vsyncpa [#allocation4], 0  ;;  %s1305_s18 = smov [#allocation2]   ;;  %s1233_s22 = scalar_lea.hbm %s1428_s1, 8000 }
   0x3   :  { %s20_s19 = sshll.u32 %s1305_s18, 4  ;;  %p1234_p0 = scmp.ne.s32.totalorder %s1428_s1, %s1233_s22  ;;  %s21_s19 = int_to_ptr.vmem [resolvable:$true] %s20_s19 }
   0x4   :  { %p1237_p1 = scmp.lt.u32.totalorder %s1233_s22, %s1428_s1 }
   0x6   :  { %p1239_p2 = pnand %p1237_p1, %p1234_p0 }
   0x8   :  { %1242 = shalt.err (!%p1239_p2)
}
   0x9   :  { %s1243_s27 = scalar_lea.vmem %s21_s19, 8000  ;;  %p1248_p4 = scmp.lt.s32.totalorder %s21_s19, %s21_s19 }
   0xa   :  { %p1244_p3 = scmp.ne.s32.totalorder %s21_s19, %s1243_s27  ;;  %p1249_p5 = scmp.lt.s32.totalorder %s1243_s27, %s1243_s27 }
   0xc   :  { %p1250_p6 = por %p1249_p5, %p1248_p4 }
   0xe   :  { %p1251_p7 = pnand %p1250_p6, %p1244_p3 }
  0x10   :  { %1254 = shalt.err (!%p1251_p7)
}
  0x11   :  { %s1306_s28 = smov 64   ;;  %s1307_s29 = smov 4  }
  0x12   :  { %26 = dma.hbm_to_vmem [thread:$0]  %s1428_s1, 8000, %s21_s19, [#allocation3], %s1306_s28, %s1306_s28, %s1307_s29  }
  0x13   :  { %s1308_s7 = smov [#allocation5]   ;;  %s1255_s11 = scalar_lea.hbm %s1430_s3, 2048 }
  0x14   :  { %s34_s8 = sshll.u32 %s1308_s7, 4  ;;  %p1256_p8 = scmp.ne.s32.totalorder %s1430_s3, %s1255_s11  ;;  %s35_s8 = int_to_ptr.vmem [resolvable:$true] %s34_s8 }
  0x15   :  { %p1259_p9 = scmp.lt.u32.totalorder %s1255_s11, %s1430_s3 }
  0x17   :  { %p1261_p10 = pnand %p1259_p9, %p1256_p8 }
  0x19   :  { %1264 = shalt.err (!%p1261_p10)
}
  0x1a   :  { %s1265_s16 = scalar_lea.vmem %s35_s8, 2048  ;;  %p1270_p12 = scmp.lt.s32.totalorder %s35_s8, %s35_s8 }
  0x1b   :  { %p1266_p11 = scmp.ne.s32.totalorder %s35_s8, %s1265_s16  ;;  %p1271_p13 = scmp.lt.s32.totalorder %s1265_s16, %s1265_s16 }
  0x1d   :  { %p1272_p0 = por %p1271_p13, %p1270_p12 }
  0x1f   :  { %p1273_p1 = pnand %p1272_p0, %p1266_p11 }
  0x21   :  { %1276 = shalt.err (!%p1273_p1)
}
  0x22   :  { %s1309_s1 = smov 128   ;;  %s1310_s17 = smov 8  }
  0x23   :  { %40 = dma.hbm_to_vmem [thread:$0]  %s1430_s3, 2048, %s35_s8, [#allocation6], %s1309_s1, %s1309_s1, %s1310_s17  }
  0x24   :  { %1299 = dma.done.wait [#allocation3], 8000  }
  0x25   :  { %1300 = vsyncadd [#allocation3], 4294959296 }
  0x26   :  { %1301 = dma.done.wait [#allocation6], 2048  }
  0x27   :  { %1302 = vsyncadd [#allocation6], 4294965248  ;;  %v1139_v0 = vld [vmem:[#allocation2 + $0x40] sm:$0xff]   ;;  %v1143_v4 = vld [vmem:[#allocation2 + $0x48] sm:$0xff]   ;;  %v1311_v22 = vmov 1966171168   ;;  %v188_v24 = vlaneseq }
  0x28   :  { %v1140_v1 = vld [vmem:[#allocation2 + $0xc0] sm:$0xff]   ;;  %1064 = vmatprep.subr.bf16.mxu0 %v1139_v0  ;;  %v1144_v5 = vld [vmem:[#allocation2 + $0xc8] sm:$0xff]   ;;  %v1147_v8 = vld [vmem:[#allocation2 + $0x50] sm:$0xff]   ;;  %v186_v23 = vunpack.c.l.s4 %v1311_v22  ;;  %v1312_v42 = vmov 0   ;;  %vm615_vm0 = vcmask 850944   ;;  %vm619_vm1 = vcmask 1043456  }
  0x29   :  { %v1141_v2 = vld [vmem:[#allocation2] sm:$0xff]   ;;  %1086 = vmatprep.subr.bf16.mxu1 %v1140_v1  ;;  %v1145_v6 = vld [vmem:[#allocation2 + $0x8] sm:$0xff]   ;;  %v1148_v9 = vld [vmem:[#allocation2 + $0xd0] sm:$0xff]   ;;  %v1368_v30 = vshrl.u32 %v188_v24, 7  ;;  %vm934_vm2 = vcmask 1041408  }
  0x2a   :  { %v1142_v3 = vld [vmem:[#allocation2 + $0x80] sm:$0xff]   ;;  %1065 = vmatpush3.bf16.msra.mxu0 %v1141_v2  ;;  %v1146_v7 = vld [vmem:[#allocation2 + $0x88] sm:$0xff]   ;;  %v1149_v10 = vld [vmem:[#allocation2 + $0x10] sm:$0xff]   ;;  %v187_v29 = vunpack.c.0.s8 %v186_v23 }
  0x2b   :  { %1087 = vmatpush3.bf16.msra.mxu1 %v1142_v3  ;;  %1066 = vmatprep.subr.bf16.mxu0 %v1143_v4  ;;  %v1150_v11 = vld [vmem:[#allocation2 + $0x90] sm:$0xff]   ;;  %v1151_v12 = vld [vmem:[#allocation2 + $0x58] sm:$0xff]   ;;  %v1155_v16 = vld [vmem:[#allocation2 + $0x60] sm:$0xff]  }
  0x2c   :  { %1088 = vmatprep.subr.bf16.mxu1 %v1144_v5  ;;  %v1152_v13 = vld [vmem:[#allocation2 + $0xd8] sm:$0xff]   ;;  %v1156_v17 = vld [vmem:[#allocation2 + $0xe0] sm:$0xff]   ;;  %v1159_v20 = vld [vmem:[#allocation2 + $0x68] sm:$0xff]   ;;  %v1371_v35 = vsub.s32 %v187_v29, %v1368_v30 }
  0x2d   :  { %v1153_v14 = vld [vmem:[#allocation2 + $0x18] sm:$0xff]   ;;  %v1157_v18 = vld [vmem:[#allocation2 + $0x20] sm:$0xff]   ;;  %v1160_v21 = vld [vmem:[#allocation2 + $0xe8] sm:$0xff]  }
  0x2e   :  { %1067 = vmatpush3.bf16.msra.mxu0 %v1145_v6  ;;  %v1154_v15 = vld [vmem:[#allocation2 + $0x98] sm:$0xff]   ;;  %v1158_v19 = vld [vmem:[#allocation2 + $0xa0] sm:$0xff]   ;;  %v1161_v25 = vld [vmem:[#allocation2 + $0x28] sm:$0xff]  }
  0x2f   :  { %1089 = vmatpush3.bf16.msra.mxu1 %v1146_v7  ;;  %1068 = vmatprep.subr.bf16.mxu0 %v1147_v8  ;;  %v1162_v26 = vld [vmem:[#allocation2 + $0xa8] sm:$0xff]   ;;  %v1163_v27 = vld [vmem:[#allocation2 + $0x70] sm:$0xff]   ;;  %v1167_v33 = vld [vmem:[#allocation2 + $0x78] sm:$0xff]  }
  0x30   :  { %1090 = vmatprep.subr.bf16.mxu1 %v1148_v9  ;;  %v1164_v28 = vld [vmem:[#allocation2 + $0xf0] sm:$0xff]   ;;  %v1168_v34 = vld [vmem:[#allocation2 + $0xf8] sm:$0xff]   ;;  %v50_v38 = vld [vmem:[%s1427_s0] sm:$0xff] }
  0x31   :  { %v1165_v31 = vld [vmem:[#allocation2 + $0x30] sm:$0xff]   ;;  %v1169_v36 = vld [vmem:[#allocation2 + $0x38] sm:$0xff]   ;;  %v184_v39 = vcombine.high %v50_v38, %v50_v38  ;;  %v191_v40 = vrot.slane %v50_v38, %v1371_v35  ;;  %v1172_v41 = vld [vmem:[#allocation2 + $0x140] sm:$0xff]  }
  0x32   :  { %1069 = vmatpush3.bf16.msra.mxu0 %v1149_v10  ;;  %v1166_v32 = vld [vmem:[#allocation2 + $0xb0] sm:$0xff]   ;;  %v1170_v37 = vld [vmem:[#allocation2 + $0xb8] sm:$0xff]   ;;  %v1173_v47 = vld [vmem:[#allocation2 + $0x100] sm:$0xff]  }
  0x33   :  { %1091 = vmatpush3.bf16.msra.mxu1 %v1150_v11  ;;  %1070 = vmatprep.subr.bf16.mxu0 %v1151_v12  ;;  %v199_v43 = vcombine.high %v191_v40, %v191_v40  ;;  %v207_v44 = vrot.slane %v191_v40, %v1371_v35  ;;  %v1380_v45 = vrot.slane %v184_v39, %v1371_v35  ;;  %v1175_v50 = vld [vmem:[#allocation2 + $0x148] sm:$0xff]   ;;  %v1174_v52 = vld [vmem:[#allocation2 + $0x180] sm:$0xff]   ;;  %v1178_v56 = vld [vmem:[#allocation2 + $0x150] sm:$0xff]  }
  0x34   :  { %1092 = vmatprep.subr.bf16.mxu1 %v1152_v13  ;;  %v1176_v54 = vld [vmem:[#allocation2 + $0x108] sm:$0xff]   ;;  %v1179_v58 = vld [vmem:[#allocation2 + $0x110] sm:$0xff]   ;;  %v1181_v59 = vld [vmem:[#allocation2 + $0x158] sm:$0xff]  }
  0x35   :  { %v221_v46 = vrot.slane %v199_v43, %v1371_v35  ;;  %v200_v48 = vcombine.high %v1380_v45, %v1380_v45  ;;  %v229_v49 = vcombine.high %v207_v44, %v207_v44  ;;  %v1177_v57 = vld [vmem:[#allocation2 + $0x188] sm:$0xff]   ;;  %v1180_v60 = vld [vmem:[#allocation2 + $0x190] sm:$0xff]   ;;  %v1182_v61 = vld [vmem:[#allocation2 + $0x118] sm:$0xff]   ;;  %v214_v11 = vrot.slane %v1380_v45, %v1371_v35 }
  0x36   :  { %1071 = vmatpush3.bf16.msra.mxu0 %v1153_v14  ;;  %v1184_v62 = vld [vmem:[#allocation2 + $0x160] sm:$0xff]   ;;  %v1183_v63 = vld [vmem:[#allocation2 + $0x198] sm:$0xff]   ;;  %v1187_v1 = vld [vmem:[#allocation2 + $0x168] sm:$0xff]  }
  0x37   :  { %1093 = vmatpush3.bf16.msra.mxu1 %v1154_v15  ;;  %1072 = vmatprep.subr.bf16.mxu0 %v1155_v16  ;;  %v231_v51 = vcombine.high %v221_v46, %v221_v46  ;;  %v228_v53 = vrot.slane %v200_v48, %v1371_v35  ;;  %v1185_v0 = vld [vmem:[#allocation2 + $0x120] sm:$0xff]   ;;  %v1188_v3 = vld [vmem:[#allocation2 + $0x128] sm:$0xff]   ;;  %v1190_v4 = vld [vmem:[#allocation2 + $0x170] sm:$0xff]  }
  0x38   :  { %1094 = vmatprep.subr.bf16.mxu1 %v1156_v17  ;;  %655 = vmatprep.mubr.bf16.mxu0 %v221_v46  ;;  %v1186_v2 = vld [vmem:[#allocation2 + $0x1a0] sm:$0xff]   ;;  %v1189_v5 = vld [vmem:[#allocation2 + $0x1a8] sm:$0xff]   ;;  %v1191_v6 = vld [vmem:[#allocation2 + $0x130] sm:$0xff]  }
  0x39   :  { %695 = vmatprep.mubr.bf16.mxu1 %v231_v51  ;;  %v232_v55 = vcombine.high %v228_v53, %v228_v53  ;;  %v1192_v7 = vld [vmem:[#allocation2 + $0x1b0] sm:$0xff]   ;;  %v1193_v8 = vld [vmem:[#allocation2 + $0x178] sm:$0xff]   ;;  %v1196_v12 = vld [vmem:[#allocation2 + $0x1c0] sm:$0xff]  }
  0x3a   :  { %1073 = vmatpush3.bf16.msra.mxu0 %v1157_v18  ;;  %v1194_v9 = vld [vmem:[#allocation2 + $0x138] sm:$0xff]   ;;  %v1197_v13 = vld [vmem:[#allocation2 + $0x1c8] sm:$0xff]   ;;  %v1198_v14 = vld [vmem:[#allocation2 + $0x1d0] sm:$0xff]  }
  0x3b   :  { %1095 = vmatpush3.bf16.msra.mxu1 %v1158_v19  ;;  %1074 = vmatprep.subr.bf16.mxu0 %v1159_v20  ;;  %v1195_v10 = vld [vmem:[#allocation2 + $0x1b8] sm:$0xff]   ;;  %v1200_v16 = vld [vmem:[#allocation2 + $0x1e0] sm:$0xff]   ;;  %v1201_v17 = vld [vmem:[#allocation2 + $0x1e8] sm:$0xff]   ;;  %v230_v20 = vcombine.high %v214_v11, %v214_v11 }
  0x3c   :  { %1096 = vmatprep.subr.bf16.mxu1 %v1160_v21  ;;  %v1199_v15 = vld [vmem:[#allocation2 + $0x1d8] sm:$0xff]   ;;  %v1202_v18 = vld [vmem:[#allocation2 + $0x1f0] ss:$0 sps:$4 sm:$0xff]   ;;  %v1206_v24 = vld [vmem:[#allocation5 + $0x10] ss:$8 sps:$4 sm:$0xff]  }
  0x3d   :  { %v621_v19 = vsel %vm619_vm1, %v1202_v18, 0  ;;  %v1203_v21 = vld [vmem:[#allocation5] ss:$8 sps:$4 sm:$0xff]   ;;  %v1205_v22 = vld [vmem:[#allocation5 + $0x4] ss:$8 sps:$4 sm:$0xff]  }
  0x3e   :  { %1075 = vmatpush3.bf16.msra.mxu0 %v1161_v25  ;;  %v1208_v23 = vld [vmem:[#allocation5 + $0x14] ss:$8 sps:$4 sm:$0xff]   ;;  %v1211_v25 = vld [vmem:[#allocation5 + $0x24] ss:$8 sps:$4 sm:$0xff]   ;;  %v1221_v35 = vld [vmem:[#allocation5 + $0x60] ss:$8 sps:$4 sm:$0xff]  }
  0x3f   :  { %1097 = vmatpush3.bf16.msra.mxu1 %v1162_v26  ;;  %1076 = vmatprep.subr.bf16.mxu0 %v1163_v27  ;;  %v1209_v26 = vld [vmem:[#allocation5 + $0x20] ss:$8 sps:$4 sm:$0xff]   ;;  %v1214_v27 = vld [vmem:[#allocation5 + $0x34] ss:$8 sps:$4 sm:$0xff]   ;;  %v1217_v29 = vld [vmem:[#allocation5 + $0x44] ss:$8 sps:$4 sm:$0xff]  }
  0x40   :  { %1098 = vmatprep.subr.bf16.mxu1 %v1164_v28  ;;  %v1212_v28 = vld [vmem:[#allocation5 + $0x30] ss:$8 sps:$4 sm:$0xff]   ;;  %v982_v39 = vld [vmem:[%s1429_s2] ss:$0 sm:$0xff] }
  0x42   :  { %1077 = vmatpush3.bf16.msra.mxu0 %v1165_v31  ;;  %v1215_v31 = vld [vmem:[#allocation5 + $0x40] ss:$8 sps:$4 sm:$0xff]  }
  0x43   :  { %1099 = vmatpush3.bf16.msra.mxu1 %v1166_v32  ;;  %1078 = vmatprep.subr.bf16.mxu0 %v1167_v33  ;;  %v1220_v32 = vld [vmem:[#allocation5 + $0x54] ss:$8 sps:$4 sm:$0xff]   ;;  %v1218_v33 = vld [vmem:[#allocation5 + $0x50] ss:$8 sps:$4 sm:$0xff]  }
  0x44   :  { %1100 = vmatprep.subr.bf16.mxu1 %v1168_v34  ;;  %v1223_v34 = vld [vmem:[#allocation5 + $0x64] ss:$8 sps:$4 sm:$0xff]  }
  0x46   :  { %1079 = vmatpush3.bf16.msra.mxu0 %v1169_v36  ;;  %v1226_v36 = vld [vmem:[#allocation5 + $0x74] ss:$8 sps:$4 sm:$0xff]  }
  0x47   :  { %1101 = vmatpush3.bf16.msra.mxu1 %v1170_v37  ;;  %1108 = vmatprep.subr.bf16.mxu0 %v1172_v41  ;;  %v1224_v37 = vld [vmem:[#allocation5 + $0x70] ss:$8 sps:$4 sm:$0xff]  }
  0x48   :  { %743 = vmatprep.subr.bf16.mxu1 %v1312_v42 }
  0x49   :  { %656 = vmatmul.mubr.bf16.vlgmr.msra.gmra.mrb[0].mxu0 %v207_v44 }
  0x4a   :  { %1109 = vmatpush3.bf16.msra.mxu0 %v1173_v47  ;;  %696 = vmatmul.mubr.bf16.vlgmr.msra.gmra.mrb[0].mxu1 %v229_v49 }
  0x4b   :  { %1110 = vmatprep.subr.bf16.mxu0 %v1175_v50  ;;  %744 = vmatpush1.bf16.msra.mxu1 %v1174_v52 }
  0x4c   :  { %735 = vmatprep.mubr.bf16.mxu0 %v228_v53  ;;  %745 = vmatprep.subr.bf16.mxu1 %v1312_v42 }
  0x4d   :  { %1046 = vmatprep.mubr.msk.bf16.mxu1 %vm615_vm0, %v232_v55 }
  0x4e   :  { %1111 = vmatpush3.bf16.msra.mxu0 %v1176_v54 }
  0x4f   :  { %1112 = vmatprep.subr.bf16.mxu0 %v1178_v56  ;;  %746 = vmatpush1.bf16.msra.mxu1 %v1177_v57 }
  0x50   :  { %747 = vmatprep.subr.bf16.mxu1 %v1312_v42 }
  0x52   :  { %1113 = vmatpush3.bf16.msra.mxu0 %v1179_v58 }
  0x53   :  { %1114 = vmatprep.subr.bf16.mxu0 %v1181_v59  ;;  %748 = vmatpush1.bf16.msra.mxu1 %v1180_v60 }
  0x54   :  { %749 = vmatprep.subr.bf16.mxu1 %v1312_v42 }
  0x56   :  { %1115 = vmatpush3.bf16.msra.mxu0 %v1182_v61 }
  0x57   :  { %1116 = vmatprep.subr.bf16.mxu0 %v1184_v62  ;;  %750 = vmatpush1.bf16.msra.mxu1 %v1183_v63 }
  0x58   :  { %751 = vmatprep.subr.bf16.mxu1 %v1312_v42 }
  0x5a   :  { %1117 = vmatpush3.bf16.msra.mxu0 %v1185_v0  ;;  %v805_v0 = vsub.s32 0, %v1368_v30 }
  0x5b   :  { %1118 = vmatprep.subr.bf16.mxu0 %v1187_v1  ;;  %752 = vmatpush1.bf16.msra.mxu1 %v1186_v2  ;;  %v801_v1 = vld [vmem:[%s1431_s4] sm:$0x3]  ;;  %v809_v2 = vsub.s32 1, %v1368_v30  ;;  %s1313_s4 = smov [#allocation7]  }
  0x5c   :  { %753 = vmatprep.subr.bf16.mxu1 %v1312_v42  ;;  %s972_s23 = sshll.u32 %s1313_s4, 4  ;;  %s973_s23 = int_to_ptr.vmem [resolvable:$true] %s972_s23 }
  0x5d   :  { %s1277_s24 = scalar_lea.vmem %s973_s23, 64  ;;  %p1282_p3 = scmp.lt.s32.totalorder %s973_s23, %s973_s23 }
  0x5e   :  { %1119 = vmatpush3.bf16.msra.mxu0 %v1188_v3  ;;  %v806_v3 = vrot.slane %v801_v1, %v805_v0  ;;  %p1278_p2 = scmp.ne.s32.totalorder %s973_s23, %s1277_s24  ;;  %p1283_p4 = scmp.lt.s32.totalorder %s1277_s24, %s1277_s24 }
  0x5f   :  { %1120 = vmatprep.subr.bf16.mxu0 %v1190_v4  ;;  %754 = vmatpush1.bf16.msra.mxu1 %v1189_v5  ;;  %v810_v4 = vrot.slane %v801_v1, %v809_v2 }
  0x60   :  { %755 = vmatprep.subr.bf16.mxu1 %v1312_v42  ;;  %p1284_p5 = por %p1283_p4, %p1282_p3 }
  0x62   :  { %1121 = vmatpush3.bf16.msra.mxu0 %v1191_v6  ;;  %p1285_p6 = pnand %p1284_p5, %p1278_p2 }
  0x63   :  { %1122 = vmatprep.subr.bf16.mxu0 %v1193_v8  ;;  %756 = vmatpush1.bf16.msra.mxu1 %v1192_v7 }
  0x64   :  { %757 = vmatprep.subr.bf16.mxu1 %v1312_v42 }
  0x66   :  { %1123 = vmatpush3.bf16.msra.mxu0 %v1194_v9 }
  0x67   :  { %758 = vmatpush1.bf16.msra.mxu1 %v1195_v10  ;;  %893 = vmatprep.subr.bf16.mxu0 %v1205_v22 }
  0x68   :  { %759 = vmatprep.subr.bf16.mxu1 %v1312_v42 }
  0x69   :  { %736 = vmatmul.mubr.bf16.vlgmr.msra.gmra.mrb[4].mxu0 %v214_v11 }
  0x6a   :  { %925 = vmatprep.mubr.bf16.mxu0 %v1312_v42  ;;  %894 = vmatpush1.bf16.msra.mxu0 %v1203_v21 }
  0x6b   :  { %760 = vmatpush1.bf16.msra.mxu1 %v1196_v12  ;;  %895 = vmatprep.subr.bf16.mxu0 %v1208_v23 }
  0x6c   :  { %761 = vmatprep.subr.bf16.mxu1 %v1312_v42 }
  0x6e   :  { %896 = vmatpush1.bf16.msra.mxu0 %v1206_v24 }
  0x6f   :  { %762 = vmatpush1.bf16.msra.mxu1 %v1197_v13  ;;  %897 = vmatprep.subr.bf16.mxu0 %v1211_v25 }
  0x70   :  { %763 = vmatprep.subr.bf16.mxu1 %v1312_v42 }
  0x72   :  { %898 = vmatpush1.bf16.msra.mxu0 %v1209_v26 }
  0x73   :  { %764 = vmatpush1.bf16.msra.mxu1 %v1198_v14  ;;  %899 = vmatprep.subr.bf16.mxu0 %v1214_v27 }
  0x74   :  { %765 = vmatprep.subr.bf16.mxu1 %v1312_v42 }
  0x76   :  { %900 = vmatpush1.bf16.msra.mxu0 %v1212_v28 }
  0x77   :  { %766 = vmatpush1.bf16.msra.mxu1 %v1199_v15  ;;  %901 = vmatprep.subr.bf16.mxu0 %v1217_v29 }
  0x78   :  { %767 = vmatprep.subr.bf16.mxu1 %v1312_v42 }
  0x7a   :  { %902 = vmatpush1.bf16.msra.mxu0 %v1215_v31 }
  0x7b   :  { %768 = vmatpush1.bf16.msra.mxu1 %v1200_v16  ;;  %903 = vmatprep.subr.bf16.mxu0 %v1220_v32 }
  0x7c   :  { %769 = vmatprep.subr.bf16.mxu1 %v1312_v42 }
  0x7e   :  { %904 = vmatpush1.bf16.msra.mxu0 %v1218_v33 }
  0x7f   :  { %770 = vmatpush1.bf16.msra.mxu1 %v1201_v17  ;;  %905 = vmatprep.subr.bf16.mxu0 %v1223_v34 }
  0x80   :  { %771 = vmatprep.subr.bf16.mxu1 %v1312_v42 }
  0x82   :  { %906 = vmatpush1.bf16.msra.mxu0 %v1221_v35 }
  0x83   :  { %772 = vmatpush1.bf16.msra.mxu1 %v621_v19  ;;  %907 = vmatprep.subr.bf16.mxu0 %v1226_v36 }
  0x86   :  { %776 = vmatmul.mubr.bf16.vlgmr.msra.gmra.mrb[4].mxu1 %v230_v20  ;;  %908 = vmatpush1.bf16.msra.mxu0 %v1224_v37 }
 0x11c   :  { %v1080_v38 = vpop.f32.mrb[0].mxu0 }
 0x11d   :  { %v1081_v40 = vpop.f32.mrb[1].mxu0  ;;  %v1102_v41 = vpop.f32.mrb[0].mxu1 }
 0x11e   :  { %v1082_v42 = vadd.f32 %v1081_v40, %v1080_v38  ;;  %v1083_v43 = vpop.f32.mrb[2].mxu0  ;;  %v1103_v44 = vpop.f32.mrb[1].mxu1 }
 0x11f   :  { %v1084_v45 = vpop.f32.mrb[3].mxu0  ;;  %v1104_v47 = vadd.f32 %v1103_v44, %v1102_v41  ;;  %v1105_v48 = vpop.f32.mrb[2].mxu1 }
 0x120   :  { %v658_v46 = vadd.f32 %v1082_v42, %v982_v39  ;;  %v1106_v49 = vpop.f32.mrb[3].mxu1 }
 0x122   :  { %v698_v50 = vadd.f32 %v1104_v47, %v658_v46 }
 0x13c   :  { %v1124_v51 = vpop.f32.mrb[4].mxu0 }
 0x13d   :  { %v1125_v52 = vpop.f32.mrb[5].mxu0 }
 0x13e   :  { %v1126_v53 = vadd.f32 %v1125_v52, %v1124_v51  ;;  %v1127_v54 = vpop.f32.mrb[6].mxu0 }
 0x13f   :  { %v1128_v55 = vpop.f32.mrb[7].mxu0 }
 0x140   :  { %v738_v56 = vadd.f32 %v1126_v53, %v698_v50 }
 0x159   :  { %v777_v57 = vpop.f32.mrb[4].mxu1 }
 0x15a   :  { %v778_v58 = vadd.f32 %v777_v57, %v738_v56  ;;  %v779_v59 = vpop.f32.mrb[5].mxu1 }
 0x15b   :  { %v780_v60 = vpop.f32.mrb[6].mxu1 }
 0x15c   :  { %v783_v61 = vmax.f32 %v778_v58, 0.0  ;;  %v781_v62 = vpop.f32.mrb[7].mxu1 }
 0x15e   :  { %v784_v63 = vpack.c.bf16 %v783_v61, %v783_v61 }
 0x160   :  { %926 = vmatmul.mubr.bf16.vlgmr.msra.gmra.mrb[8].mxu0 %v784_v63 }
 0x233   :  { %v927_v5 = vpop.f32.mrb[8].mxu0 }
 0x234   :  { %v928_v6 = vadd.f32 %v927_v5, %v806_v3  ;;  %v929_v7 = vpop.f32.mrb[9].mxu0 }
 0x235   :  { %v930_v8 = vadd.f32 %v929_v7, %v810_v4  ;;  %v931_v9 = vpop.f32.mrb[10].mxu0 }
 0x236   :  { %v932_v10 = vpop.f32.mrb[11].mxu0  ;;  %v935_v11 = vsel %vm934_vm2, %v928_v6, -inf }
 0x237   :  { %v936_v12 = vsel %vm934_vm2, %v930_v8, -inf }
 0x238   :  { %v937_v13 = vmax.f32 %v935_v11, %v936_v12 }
 0x23a   :  { %938 = vmax.xlane.f32.xlu0 %v937_v13 }
 0x2c7   :  { %v939_v14 = vpop.xlane.xlu0 %938 }
 0x2c8   :  { %v940_v15 = vsub.f32 %v928_v6, %v939_v14  ;;  %v941_v16 = vsub.f32 %v930_v8, %v939_v14 }
 0x2ca   :  { %v942_v17 = vmul.f32 1.442695, %v940_v15  ;;  %v944_v30 = vmul.f32 1.442695, %v941_v16 }
 0x2cc   :  { %1227 = vpow2.f32 %v942_v17 }
 0x2cd   :  { %1229 = vpow2.f32 %v944_v30 }
 0x2d6   :  { %v1228_v18 = vpop.eup %1227 }
 0x2d7   :  { %v1230_v19 = vpop.eup %1229  ;;  %v946_v20 = vsel %vm934_vm2, %v1228_v18, 0.0 }
 0x2d8   :  { %v947_v21 = vsel %vm934_vm2, %v1230_v19, 0.0 }
 0x2d9   :  { %v948_v22 = vadd.f32 %v947_v21, %v946_v20 }
 0x2db   :  { %949 = vadd.xlane.f32.xlu0 %v948_v22 }
 0x368   :  { %v950_v23 = vpop.xlane.xlu0 %949 }
 0x369   :  { %1231 = vrcp.f32 %v950_v23 }
 0x373   :  { %v1232_v24 = vpop.eup %1231 }
 0x374   :  { %v952_v25 = vmul.f32 %v1232_v24, %v1228_v18  ;;  %v953_v26 = vmul.f32 %v1232_v24, %v1230_v19 }
 0x376   :  { %v956_v27 = vcombine.low %v952_v25, %v953_v26 }
 0x378   :  { %1063 = vst.sshfl [vmem:[#allocation7] sm:$0x33 pattern:$0x76325410] %v956_v27 }
 0x379   :  { %1288 = shalt.err (!%p1285_p6)
}
 0x37a   :  { %s1289_s27 = scalar_lea.hbm %s1432_s5, 64 }
 0x37b   :  { %p1290_p7 = scmp.ne.s32.totalorder %s1432_s5, %s1289_s27  ;;  %p1293_p8 = scmp.lt.u32.totalorder %s1289_s27, %s1432_s5 }
 0x37d   :  { %p1295_p9 = pnand %p1293_p8, %p1290_p7 }
 0x37f   :  { %1298 = shalt.err (!%p1295_p9)
}
 0x380   :  { %975 = dma.vmem_to_hbm [thread:$0]  %s973_s23, 64, %s1432_s5, [#allocation4]  }
 0x381   :  { %1303 = dma.done.wait [#allocation4], 64  }
 0x382   :  { %1304 = vsyncadd [#allocation4], 4294967232 }
 0x383   :  { %979 = vsyncpa [#allocation3], 1 }
 0x384   :  { %980 = vsyncpa [#allocation6], 1 }
 0x385   :  { %981 = vsyncpa [#allocation4], 1 }

</bundles_post_ra>
